<compile_context>
chip_gen: v6e
topology: v6e:2x2x1
jax: 0.10.0
libtpu: 0.0.40
codegen_flags: <defaults>
</compile_context>

<pallas_src>
import functools

import jax
import jax.numpy as jnp
from jax.experimental import pallas as pl
from jax.experimental.pallas import tpu as pltpu


# --------------------------------------------------------------------------- #
# Kernels
# --------------------------------------------------------------------------- #

def _part_pool_single_kernel(x_ref, o_ref, *, part_num, seg_hw, method, inv_count):
    """Whole H*W in one block: reduce each segment over lanes and store directly.

    x_ref: (1, c_tile, H*W)   o_ref: (1, c_tile, part_num)
    """
    is_max = (method == 'max')
    cols = []
    for p in range(part_num):
        seg = x_ref[0, :, pl.ds(p * seg_hw, seg_hw)]          # (c_tile, seg_hw)
        if is_max:
            cols.append(jnp.max(seg, axis=-1, keepdims=True))  # native dtype
        else:
            cols.append(jnp.sum(seg.astype(jnp.float32), axis=-1, keepdims=True))
    res = cols[0] if part_num == 1 else jnp.concatenate(cols, axis=-1)
    if not is_max:
        res = res * inv_count
    o_ref[0] = res.astype(o_ref.dtype)


def _part_pool_chunked_kernel(x_ref, o_ref, acc_ref, *, part_num, seg_hw,
                              hw_chunk, method, inv_count):
    """H*W streamed in chunks; accumulate into an f32 (c_tile, part_num) scratch.

    x_ref: (1, c_tile, hw_chunk)   o_ref: (1, c_tile, part_num)
    acc_ref: (c_tile, part_num) float32
    """
    is_max = (method == 'max')
    h = pl.program_id(2)
    nh = pl.num_programs(2)

    @pl.when(h == 0)
    def _init():
        if is_max:
            acc_ref[...] = jnp.full_like(acc_ref, -jnp.inf)
        else:
            acc_ref[...] = jnp.zeros_like(acc_ref)

    col_ids = jax.lax.broadcasted_iota(jnp.int32, (1, part_num), 1)

    def _reduce(seg):                                          # (c_tile, L) -> (c_tile, 1) f32
        if is_max:
            return jnp.max(seg, axis=-1, keepdims=True).astype(jnp.float32)
        return jnp.sum(seg.astype(jnp.float32), axis=-1, keepdims=True)

    acc = acc_ref[...]
    if hw_chunk % seg_hw == 0:
        # Chunk covers `ppb` whole parts: parts [h*ppb, (h+1)*ppb).
        ppb = hw_chunk // seg_hw
        p0 = h * ppb
        for j in range(ppb):
            red = _reduce(x_ref[0, :, pl.ds(j * seg_hw, seg_hw)])
            hit = col_ids == (p0 + j)
            acc = jnp.where(hit, jnp.maximum(acc, red) if is_max else acc + red, acc)
    else:
        # Chunk is a fraction of one part: part index = h // chunks_per_part.
        cpp = seg_hw // hw_chunk
        red = _reduce(x_ref[0])
        hit = col_ids == (h // cpp)
        acc = jnp.where(hit, jnp.maximum(acc, red) if is_max else acc + red, acc)
    acc_ref[...] = acc

    @pl.when(h == nh - 1)
    def _finalize():
        res = acc_ref[...]
        if not is_max:
            res = res * inv_count
        o_ref[0] = res.astype(o_ref.dtype)


# --------------------------------------------------------------------------- #
# Tiling helpers
# --------------------------------------------------------------------------- #

def _round_up(x, m):
    return (x + m - 1) // m * m


def _sublane_mult(dtype):
    # f32 -> 8, bf16 -> 16, int8/fp8 -> 32 sublane packing.
    return max(8, 32 // jnp.dtype(dtype).itemsize)


def _padded_block_bytes(c_tile, hw, dtype):
    """Actual VMEM footprint of a (1, c_tile, hw) block (lane/sublane padded)."""
    itemsize = jnp.dtype(dtype).itemsize
    return _round_up(c_tile, _sublane_mult(dtype)) * _round_up(hw, 128) * itemsize


def _device_budgets():
    """(per-input-block byte budget, VMEM capacity clamp) — generation aware."""
    kind = ""
    try:
        kind = jax.devices()[0].device_kind.lower()
    except Exception:
        pass
    try:
        vmem_cap = int(pltpu.get_tpu_info().vmem_capacity_bytes)
    except Exception:
        vmem_cap = 64 * 1024 * 1024  # safe on every generation (v7x has 64 MiB)
    if "v6" in kind:
        block_bytes = 14 * 1024 * 1024   # 128 MiB VMEM: big blocks, fewest steps
    elif "v7" in kind:
        block_bytes = 7 * 1024 * 1024    # 64 MiB VMEM, 3.2 TB/s: step count matters most
    else:
        block_bytes = 5 * 1024 * 1024    # v5e / unknown: 16 MiB scoped default
    return min(block_bytes, vmem_cap // 4), vmem_cap


def _select_hw_chunk(HW, seg_hw, part_num, c_min, dtype, block_bytes):
    """Largest legal H*W chunk; prefer the full H*W (longest contiguous DMA run)."""
    if _padded_block_bytes(c_min, HW, dtype) <= block_bytes:
        return HW
    cands = []
    for m in range(1, part_num):                       # whole-part chunks
        hb = m * seg_hw
        if HW % hb == 0 and hb % 128 == 0:
            cands.append(hb)
    for d in range(128, seg_hw, 128):                  # within-part chunks
        if seg_hw % d == 0:
            cands.append(d)
    fitting = [hb for hb in cands if _padded_block_bytes(c_min, hb, dtype) <= block_bytes]
    if fitting:
        return max(fitting)
    if cands:
        return min(cands)     # wrapper raises vmem_limit_bytes (clamped to capacity)
    return HW                 # no legal chunking exists; stream the whole row


# --------------------------------------------------------------------------- #
# Public wrapper
# --------------------------------------------------------------------------- #

def part_pool(x, part_num=1, method='max', *, block_bytes=None, hw_chunk=None,
              c_tile=None):
    """x: (N, C, H, W) -> (N, C, part_num, 1), matching nn.AdaptiveMax/AvgPool2d((part_num, 1))."""
    assert method in ('max', 'avg')
    N, C, H, W = x.shape
    assert 1 <= part_num <= H
    # TODO(synk): PyTorch adaptive pooling supports uneven H splits
    # (H % part_num != 0) via variable-length segments; not implemented here.
    assert H % part_num == 0, "H must be divisible by part_num for this kernel"

    seg_h = H // part_num
    HW = H * W
    seg_hw = seg_h * W
    dtype = x.dtype
    itemsize = jnp.dtype(dtype).itemsize
    inv_count = 1.0 / float(seg_hw)
    c_tile_user = c_tile

    dev_block_bytes, vmem_cap = _device_budgets()
    if block_bytes is None:
        block_bytes = dev_block_bytes
    c_min = C if C <= 8 else 8

    # --- H*W chunking (prefer a single full-row chunk) ---
    if hw_chunk is None:
        hw_chunk = _select_hw_chunk(HW, seg_hw, part_num, c_min, dtype, block_bytes)
    if hw_chunk != HW:
        part_aligned = (hw_chunk % seg_hw == 0 and HW % hw_chunk == 0)
        within_part = (seg_hw % hw_chunk == 0)
        if not (part_aligned or within_part) or hw_chunk % 128 != 0:
            raise ValueError(f"invalid hw_chunk={hw_chunk} for H*W={HW}, part_num={part_num}")
    num_hw_blocks = HW // hw_chunk

    # --- channel tile (sublane dim): grow after the contiguous run is maximized ---
    if c_tile is None:
        lane_bytes = _round_up(hw_chunk, 128) * itemsize
        fit_c = max(1, block_bytes // lane_bytes)
        if C <= 8 or C <= fit_c:
            c_tile = C
        else:
            c_tile = max(8, (min(fit_c, C) // 8) * 8)
    if not (c_tile == C or c_tile % 8 == 0):
        raise ValueError("c_tile must equal C or be a multiple of 8")
    num_c_blocks = -(-C // c_tile)

    # Give both v7x TensorCores parallel work (no-op cost elsewhere).
    if c_tile_user is None and N == 1 and num_c_blocks == 1 and C >= 16:
        c_tile = max(8, _round_up(-(-C // 2), 8))
        num_c_blocks = -(-C // c_tile)

    # --- pad-aware VMEM limit, clamped to device capacity ---
    in_blk = _padded_block_bytes(c_tile, hw_chunk, dtype)
    out_blk = _padded_block_bytes(c_tile, part_num, dtype)
    acc_blk = (_round_up(c_tile, 8) * _round_up(part_num, 128) * 4) if num_hw_blocks > 1 else 0
    est = 2 * in_blk + 2 * out_blk + acc_blk
    vmem_limit = None
    if est > 12 * 1024 * 1024:
        vmem_limit = min(int(est * 3 // 2) + (1 << 20), vmem_cap)

    # --- free reshape: (N, C, H, W) -> (N, C, H*W); channels->sublanes, H*W->lanes ---
    xf = x.reshape(N, C, HW)

    if num_hw_blocks == 1:
        kernel = functools.partial(_part_pool_single_kernel, part_num=part_num,
                                   seg_hw=seg_hw, method=method, inv_count=inv_count)
        grid = (N, num_c_blocks)
        in_specs = [pl.BlockSpec((1, c_tile, HW), lambda n, c: (n, c, 0))]
        out_specs = pl.BlockSpec((1, c_tile, part_num), lambda n, c: (n, c, 0))
        scratch = []
        dims = ("parallel", "parallel")
    else:
        kernel = functools.partial(_part_pool_chunked_kernel, part_num=part_num,
                                   seg_hw=seg_hw, hw_chunk=hw_chunk, method=method,
                                   inv_count=inv_count)
        grid = (N, num_c_blocks, num_hw_blocks)
        in_specs = [pl.BlockSpec((1, c_tile, hw_chunk), lambda n, c, h: (n, c, h))]
        out_specs = pl.BlockSpec((1, c_tile, part_num), lambda n, c, h: (n, c, 0))
        scratch = [pltpu.VMEM((c_tile, part_num), jnp.float32)]
        dims = ("parallel", "parallel", "arbitrary")

    out = pl.pallas_call(
        kernel,
        out_shape=jax.ShapeDtypeStruct((N, C, part_num), dtype),
        grid_spec=pltpu.PrefetchScalarGridSpec(
            num_scalar_prefetch=0,
            grid=grid,
            in_specs=in_specs,
            out_specs=out_specs,
            scratch_shapes=scratch),
        compiler_params=pltpu.CompilerParams(
            dimension_semantics=dims,
            vmem_limit_bytes=vmem_limit),
    )(xf)

    # (N, C, part_num) -> (N, C, part_num, 1): free trailing-axis reshape.
    return out[..., None]


# --------------------------------------------------------------------------- #
# Reference + tests
# --------------------------------------------------------------------------- #

def _reference(x, part_num, method):
    N, C, H, W = x.shape
    seg_h = H // part_num
    xs = x.reshape(N, C, part_num, seg_h * W)
    if method == 'max':
        return jnp.max(xs, axis=-1)[..., None]
    return jnp.mean(xs.astype(jnp.float32), axis=-1).astype(x.dtype)[..., None]


if __name__ == "__main__":
    key = jax.random.PRNGKey(0)
    x = jax.random.normal(key, (2, 4, 16, 16), dtype=jnp.float32)

    # default PartPool: part_num=1, method='max'
    y = jax.block_until_ready(part_pool(x, part_num=1, method='max'))
    assert y.shape == (2, 4, 1, 1)
    assert jnp.allclose(y, _reference(x, 1, 'max'))

    # multi-part / avg variants (single-chunk fast path)
    for pn, m in [(4, 'max'), (4, 'avg'), (2, 'avg')]:
        out = jax.block_until_ready(part_pool(x, part_num=pn, method=m))
        assert out.shape == (2, 4, pn, 1)
        assert jnp.allclose(out, _reference(x, pn, m), atol=1e-5), (pn, m)

    # force the chunked accumulator path (H*W=256 streamed as 2 chunks of 128)
    for pn, m in [(1, 'max'), (1, 'avg'), (4, 'max'), (2, 'avg')]:
        out = jax.block_until_ready(part_pool(x, part_num=pn, method=m, hw_chunk=128))
        assert jnp.allclose(out, _reference(x, pn, m), atol=1e-5), (pn, m, 'chunked')

    # bf16: 'avg' accumulates in f32; 'max' stays native bf16 (exact)
    xb = x.astype(jnp.bfloat16)
    yb = jax.block_until_ready(part_pool(xb, part_num=4, method='avg'))
    refb = _reference(xb, 4, 'avg')
    assert jnp.allclose(yb.astype(jnp.float32), refb.astype(jnp.float32), atol=1e-2)
    ym = jax.block_until_ready(part_pool(xb, part_num=4, method='max'))
    assert jnp.allclose(ym.astype(jnp.float32),
                        _reference(xb, 4, 'max').astype(jnp.float32), atol=1e-2)

    # C not a multiple of the tile (partial last C block) + N=1 two-core split
    x2 = jax.random.normal(jax.random.PRNGKey(1), (1, 20, 16, 16), dtype=jnp.float32)
    y2 = jax.block_until_ready(part_pool(x2, part_num=4, method='max'))
    assert y2.shape == (1, 20, 4, 1)
    assert jnp.allclose(y2, _reference(x2, 4, 'max'), atol=1e-5)

    print("KERNEL_OK")
</pallas_src>

<mosaic_0001>
module attributes {stable_mosaic.version = 11 : i64} {
  func.func @_part_pool_single_kernel(%arg0: i32, %arg1: i32, %arg2: memref<1x4x256xf32, #tpu.memory_space<vmem>>, %arg3: memref<1x4x1xf32, #tpu.memory_space<vmem>>) attributes {dimension_semantics = [#tpu.dimension_semantics<parallel>, #tpu.dimension_semantics<parallel>], iteration_bounds = array<i64: 2, 1>, scalar_prefetch = 0 : i64, scratch_operands = 0 : i64, tpu.core_type = #tpu.core_type<tc>, window_params = [{transform_indices = @transform_0, window_bounds = array<i64: 1, 4, 256>}, {transform_indices = @transform_1, window_bounds = array<i64: 1, 4, 1>}]} {
    %c0 = arith.constant 0 : index
    %c0_0 = arith.constant 0 : index
    %c0_1 = arith.constant 0 : index
    %0 = vector.load %arg2[%c0, %c0_0, %c0_1] : memref<1x4x256xf32, #tpu.memory_space<vmem>>, vector<1x4x256xf32>
    %1 = vector.shape_cast %0 : vector<1x4x256xf32> to vector<4x256xf32>
    %cst = arith.constant dense<0xFF800000> : vector<4xf32>
    %2 = vector.multi_reduction <maximumf>, %1, %cst [1] : vector<4x256xf32> to vector<4xf32>
    %3 = vector.shape_cast %2 : vector<4xf32> to vector<4x1xf32>
    %c0_2 = arith.constant 0 : index
    %c0_3 = arith.constant 0 : index
    %c0_4 = arith.constant 0 : index
    %4 = vector.load %arg3[%c0_2, %c0_3, %c0_4] : memref<1x4x1xf32, #tpu.memory_space<vmem>>, vector<1x4x1xf32>
    %5 = vector.shape_cast %4 : vector<1x4x1xf32> to vector<4x1xf32>
    %6 = vector.shape_cast %3 : vector<4x1xf32> to vector<1x4x1xf32>
    tpu.vector_store %arg3[%c0_2, %c0_3, %c0_4], %6 {strides = array<i32>} : memref<1x4x1xf32, #tpu.memory_space<vmem>>, vector<1x4x1xf32>,
    return
  }
  func.func @transform_0(%arg0: i32, %arg1: i32) -> (i32, i32, i32) {
    %c0_i32 = arith.constant 0 : i32
    %c0_i32_0 = arith.constant 0 : i32
    return %arg0, %arg1, %c0_i32 : i32, i32, i32
  }
  func.func @transform_1(%arg0: i32, %arg1: i32) -> (i32, i32, i32) {
    %c0_i32 = arith.constant 0 : i32
    %c0_i32_0 = arith.constant 0 : i32
    return %arg0, %arg1, %c0_i32 : i32, i32, i32
  }
}

</mosaic_0001>

<bundles_post_ra>
// kernel: tpu_custom_call.1
= control target key start
LH: loop header
LB: loop body
LE: loop exit
PB: predicated region body
PF: predicated region fallthrough
CT: control target
= control target key end

     0   :  { %6 = vsyncpa [#allocation3], 0  ;;  %s515_s0 = inlined_call_operand.hbm [shape: f32[2,4,256], index: 0, kind: input, shape index: {}]   ;;  %s516_s1 = inlined_call_operand.vmem [shape: f32[2,4,1], index: 1, kind: output, shape index: {}]  }
   0x1   :  { %8 = vsyncpa [#allocation3 + $0x1], 0  ;;  %s415_s6 = smov 0   ;;  %s417_s7 = smov 0  }
   0x2   :  { %s419_s8 = smov 0   ;;  %s421_s9 = smov 0  }
   0x3   :  { %s423_s10 = smov 0   ;;  %s425_s11 = smov 0  }
   0x4 LB: > { %s255_s12 = sadd.s32 4294967295, %s402_s11   ;;  %s26_s13 = sadd.s32 1, %s398_s10  ;;  %s402_s11 = sphi %s425_s11, %s14_s11   ;;  %s398_s10 = sphi %s423_s10, %s524_s10   ;;  %s394_s9 = sphi %s421_s9, %s523_s9   ;;  %s390_s8 = sphi %s419_s8, %s522_s8   ;;  %s386_s7 = sphi %s417_s7, %s521_s7   ;;  %s382_s6 = sphi %s415_s6, %s520_s6  }
   0x5   : > { %p28_p0 = scmp.ge.s32.totalorder %s26_s13, 2  ;;  %s35_s14 = sadd.s32 1, %s390_s8 }
   0x6   : > { %p42_p1 = scmp.ne.s32.totalorder %s390_s8, %s386_s7  ;;  %p43_p2 = scmp.eq.s32.totalorder %s402_s11, 0 }
   0x7   : > { %s526_s13 = smov (%p28_p0, %s26_s13), 0  ;;  %p48_p4 = scmp.ne.s32.totalorder %s386_s7, %s382_s6 }
   0x8   : > { %p451_p3 = por %p43_p2, %p42_p1  ;;  %s30_s16 = ssub.s32 %s398_s10, %s526_s13 }
   0x9   : > { %p49_p5 = scmp.eq.s32.totalorder %s255_s12, 0  ;;  %p33_p6 = scmp.eq.s32.totalorder %s30_s16, 0 }
   0xa   : > { %p274_p8 = scmp.lt.s32.totalorder %s402_s11, 2  ;;  %s100_s19 = sand.u32 1, %s390_s8  }
   0xb   : > { %p458_p7 = por %p49_p5, %p48_p4  ;;  %s267_s20 = sshll.u32 %s398_s10, 7 }
   0xc   : > { %s464_s18 = scalar_select %p33_p6, %s390_s8, %s35_s14  }
   0xd   : > { %s259_s21 = sshll.u32 %s100_s19, 3  ;;  %s112_s24 = scalar_lea.hbm %s515_s0, %s267_s20 }
   0xe   : > { %s104_s25 = scalar_lea.vmem [#allocation2], %s259_s21  ;;  %p473_p9 = pnand %p274_p8, %p451_p3 }
   0xf   : > { %s114_s26 = sshll.u32 %s104_s25, 4  ;;  %p262_p10 = scmp.ge.s32.totalorder %s402_s11, 1  ;;  %s115_s26 = int_to_ptr.vmem [resolvable:$true] %s114_s26 }
  0x10   : > { %p119_p11 = scmp.lt.s32.totalorder %s402_s11, 3  ;;  %s101_s28 = scalar_lea.sflag [#allocation3], %s100_s19 }
  0x11   : > { %p326_p12 = pneg %p473_p9  ;;  %s337_s29 = scalar_lea.vmem %s115_s26, 128 }
  0x12   : > { %p338_p13 = scmp.ne.s32.totalorder %s115_s26, %s337_s29  ;;  %s404_s30 = smov [#allocation2]  }
  0x13   : > { %s342_s2 = sshll.u32 %s404_s30, 4  ;;  %s343_s2 = int_to_ptr.vmem [resolvable:$false] %s342_s2 }
  0x14   : > { %p340_p0 = pnand %p338_p13, %p326_p12  ;;  %s344_s3 = scalar_lea.vmem %s343_s2, 256 }
  0x15   : > { %p345_p2 = scmp.lt.s32.totalorder %s115_s26, %s343_s2  ;;  %p346_p3 = scmp.lt.s32.totalorder %s344_s3, %s337_s29 }
  0x16   : > { %p341_p1 = pneg %p340_p0 }
  0x17   : > { %p347_p4 = por %p346_p3, %p345_p2 }
  0x19   : > { %p348_p5 = pnand %p347_p4, %p341_p1 }
  0x1b   : > { %351 = shalt.err (!%p348_p5)
}
  0x1c   : > { %273 = dma.hbm_to_vmem [thread:$0]  (!%p473_p9), %s112_s24, 128, %s115_s26, %s101_s28  }
  0x1d   : > { %p120_p6 = pnand %p262_p10, %p119_p11 }
  0x1e   : > { %s125_s4 = sand.u32 (!%p120_p6), 1, %s386_s7  }
  0x1f   : > { %123 = sbr.rel (%p120_p6) target bundleno = 182 (0xb6), region = 24  ;;  %s263_s5 = sshll.u32 (!%p120_p6), %s125_s4, 3 }
  0x20   : > { %s126_s6 = scalar_lea.sflag (!%p120_p6), [#allocation3], %s125_s4  ;;  %s129_s12 = scalar_lea.vmem (!%p120_p6), [#allocation2], %s263_s5 }
  0x24   : > { %377 = dma.done.wait (%p458_p7), %s126_s6, 128  }
  0x25   : > { %379 = vsyncadd (%p458_p7), %s126_s6, 4294967168  ;;  %vm161_vm0 = vcmask 1043456   ;;  %v157_v0 = vld [vmem:[%s129_s12] sm:$0xff]  ;;  %p150_p8 = scmp.lt.s32.totalorder %s394_s9, 1  ;;  %vm167_vm1 = vcmask 3072  }
  0x26   : > { %v159_v1 = vcombine.high %v157_v0, %v157_v0  ;;  %v162_v2 = vsel %vm161_vm0, %v157_v0, -inf }
  0x27   : > { %s528_s9 = smov (!%p150_p8, %s394_s9), 1 }
  0x28   : > { %v163_v3 = vsel %vm161_vm0, %v159_v1, -inf  ;;  %s264_s14 = sshll.u32 %s528_s9, 2 }
  0x29   : > { %v164_v4 = vmax.f32 %v162_v2, %v163_v3  ;;  %s156_s19 = scalar_lea.vmem %s516_s1, %s264_s14 }
  0x2b   : > { %165 = vmax.xlane.f32.xlu0 %v164_v4 }
  0xb4   : > { %v166_v5 = vpop.xlane.xlu0 %165 }
  0xb5   : > { %168 = vst.msk [vmem:[%s156_s19] sm:$0xf] %vm167_vm1, %v166_v5 }
  0xb6 PF: > { %s14_s11 = sadd.s32 1, %s402_s11   ;;  %s520_s6 = smov %s386_s7 }
  0xb7   : > { %p11_p7 = scmp.ge.s32.totalorder %s14_s11, 4   ;;  %s521_s7 = smov %s390_s8 }
  0xb8   : > { %s522_s8 = smov %s464_s18  ;;  %s523_s9 = smov %s398_s10 }
  0xb9   : > { %s524_s10 = smov %s526_s13  ;;  %13 = sbr.rel (!%p11_p7) target bundleno = 4 (0x4), region = 64 }
  0xbe   :  { %194 = vsyncpa [#allocation3], 1 }
  0xbf   :  { %196 = vsyncpa [#allocation3 + $0x1], 1 }

</bundles_post_ra>
